<compile_context>
chip_gen: v5e
topology: v5e:2x2
jax: 0.10.0
libtpu: 0.0.40
codegen_flags: <defaults>
</compile_context>

<pallas_src>
import jax
import jax.numpy as jnp
from jax.experimental import pallas as pl
from jax.experimental.pallas import tpu as pltpu

_LANES = 128


def _sublanes_for(dtype):
    # sub-32-bit dtypes pack along sublanes: f32 vreg [8,128], bf16 [16,128],
    # int8/fp8-class [32,128].
    return {4: 8, 2: 16, 1: 32}.get(jnp.dtype(dtype).itemsize, 8)


def _round_up(v, m):
    return -(-v // m) * m


def _chip_profile():
    """Generation-aware tuning knobs (block size, #TensorCores, bf16 VALU)."""
    kind = ""
    try:
        kind = jax.devices()[0].device_kind.lower()
    except Exception:
        pass
    if "v7" in kind:
        # 2 TCs, fast HBM -> bigger blocks; 32 MiB scoped fits 64 MiB physical.
        return {"num_tc": 2, "block_bytes": 4 << 20,
                "native_bf16": True, "vmem_limit_bytes": 32 << 20}
    if "v6" in kind:
        return {"num_tc": 1, "block_bytes": 4 << 20,
                "native_bf16": True, "vmem_limit_bytes": 32 << 20}
    if "v5p" in kind or "v4" in kind:
        # Megacore chips: 2 TCs, but keep conservative block size / limits.
        return {"num_tc": 2, "block_bytes": 2 << 20,
                "native_bf16": False, "vmem_limit_bytes": None}
    # v5e / unknown: 2 MiB blocks fit the 16 MiB default scoped VMEM with
    # double-buffered in+out, no limit bump needed.
    return {"num_tc": 1, "block_bytes": 2 << 20,
            "native_bf16": False, "vmem_limit_bytes": None}


def _make_h_sigmoid_kernel(compute_dtype):
    def kernel(x_ref, o_ref):
        x = x_ref[...].astype(compute_dtype)
        # relu6(x + 3) / 6  ==  clip(x + 3, 0, 6) / 6
        y = jnp.clip(x + 3.0, 0.0, 6.0) * (1.0 / 6.0)
        o_ref[...] = y.astype(o_ref.dtype)
    return kernel


def _pick_row_tile(rows, sublanes, itemsize, prof):
    # Row tile ~= target block bytes, a multiple of the dtype's sublane packing.
    tr = max(sublanes, (prof["block_bytes"] // (_LANES * itemsize)) // sublanes * sublanes)
    if prof["num_tc"] > 1:
        # Give every TensorCore >= 2 grid steps so double-buffering overlaps.
        min_steps = 2 * prof["num_tc"]
        cap = _round_up(-(-rows // min_steps), sublanes)
        tr = min(tr, cap)
    if tr >= rows:
        # Single block: full array extent is always a legal block shape.
        tr = rows
    return tr


def h_sigmoid(x, *, donate_input=False):
    """Elementwise hard-sigmoid matching torch: ReLU6(x + 3) / 6."""
    prof = _chip_profile()
    orig_shape = x.shape
    dtype = x.dtype

    if not jnp.issubdtype(dtype, jnp.floating):
        # Integer inputs would be truncated to {0, 1}; promote to float32.
        x = x.astype(jnp.float32)
        dtype = jnp.float32

    n = x.size
    if n == 0:
        return x.reshape(orig_shape)

    itemsize = jnp.dtype(dtype).itemsize
    sub = _sublanes_for(dtype)
    if itemsize >= 4 or (prof["native_bf16"] and dtype == jnp.bfloat16):
        compute_dtype = dtype          # native bf16 VALU on v6e/v7x
    else:
        compute_dtype = jnp.float32    # upcast on v5e / fp8-class / f16

    # TODO(synk): if x can arrive with a non-default layout (lazy transpose),
    # tiling the original ND shape directly would avoid a materializing ravel.
    flat = jnp.ravel(x)
    n_main = (n // _LANES) * _LANES
    tail_n = n - n_main

    out_main = None
    if n_main:
        rows = n_main // _LANES
        x2d = flat[:n_main].reshape(rows, _LANES)  # contiguous prefix: free reshape
        tr = _pick_row_tile(rows, sub, itemsize, prof)

        out2d = pl.pallas_call(
            _make_h_sigmoid_kernel(compute_dtype),
            out_shape=jax.ShapeDtypeStruct((rows, _LANES), dtype),
            grid_spec=pltpu.PrefetchScalarGridSpec(
                num_scalar_prefetch=0,
                grid=(pl.cdiv(rows, tr),),
                in_specs=[pl.BlockSpec((tr, _LANES), lambda i: (i, 0))],
                out_specs=pl.BlockSpec((tr, _LANES), lambda i: (i, 0)),
            ),
            compiler_params=pltpu.CompilerParams(
                dimension_semantics=("parallel",),
                vmem_limit_bytes=prof["vmem_limit_bytes"],
            ),
            input_output_aliases=({0: 0} if donate_input else {}),
        )(x2d)
        out_main = out2d.reshape(n_main)

    if tail_n:
        # <128-element tail: plain jnp, negligible vs. the streamed prefix.
        # TODO(synk): the concatenate below is still one extra pass over the
        # output; a true in-place write would need buffer donation upstream.
        tail = flat[n_main:].astype(compute_dtype)
        out_tail = (jnp.clip(tail + 3.0, 0.0, 6.0) * (1.0 / 6.0)).astype(dtype)
        out_flat = out_tail if out_main is None else jnp.concatenate([out_main, out_tail])
    else:
        out_flat = out_main

    return out_flat.reshape(orig_shape)


if __name__ == "__main__":
    key = jax.random.PRNGKey(0)

    # NCHW activation tensor, consistent with conv-net usage inside the model
    # wrapped by AutoShape.
    x = jax.random.normal(key, (2, 4, 16, 16), dtype=jnp.float32) * 4.0
    out = jax.block_until_ready(h_sigmoid(x))
    ref = jnp.clip(x + 3.0, 0.0, 6.0) * (1.0 / 6.0)
    assert out.shape == x.shape and out.dtype == x.dtype
    assert jnp.max(jnp.abs(out - ref)) < 1e-6

    # Ragged (numel % 128 != 0) bf16 path: kernel handles the 128-aligned
    # prefix, plain jnp handles the <128-element tail (no whole-array pad).
    key2 = jax.random.PRNGKey(1)
    xb = (jax.random.normal(key2, (3, 5, 7, 9), dtype=jnp.float32) * 4.0).astype(jnp.bfloat16)
    outb = jax.block_until_ready(h_sigmoid(xb))
    refb = jnp.clip(xb.astype(jnp.float32) + 3.0, 0.0, 6.0) * (1.0 / 6.0)
    assert outb.shape == xb.shape and outb.dtype == xb.dtype
    # Native-bf16 compute on v6e/v7x rounds (x+3) to 8 mantissa bits before the
    # clip, so allow a couple of bf16 ulps of the [0,1] output.
    assert jnp.max(jnp.abs(outb.astype(jnp.float32) - refb)) < 2e-2

    # Empty-input edge case (previously produced a 0-size grid).
    xe = jnp.zeros((0, 3, 4, 4), dtype=jnp.float32)
    oute = jax.block_until_ready(h_sigmoid(xe))
    assert oute.shape == xe.shape

    print("KERNEL_OK")
</pallas_src>

<mosaic_0001>
module attributes {stable_mosaic.version = 11 : i64} {
  func.func @kernel(%arg0: i32, %arg1: memref<16x128xf32, #tpu.memory_space<vmem>>, %arg2: memref<16x128xf32, #tpu.memory_space<vmem>>) attributes {dimension_semantics = [#tpu.dimension_semantics<parallel>], iteration_bounds = array<i64: 1>, scalar_prefetch = 0 : i64, scratch_operands = 0 : i64, tpu.core_type = #tpu.core_type<tc>, window_params = [{transform_indices = @transform_0, window_bounds = array<i64: 16, 128>}, {transform_indices = @transform_1, window_bounds = array<i64: 16, 128>}]} {
    %c0 = arith.constant 0 : index
    %c0_0 = arith.constant 0 : index
    %0 = vector.load %arg1[%c0, %c0_0] : memref<16x128xf32, #tpu.memory_space<vmem>>, vector<16x128xf32>
    %cst = arith.constant 3.000000e+00 : f32
    %1 = vector.broadcast %cst : f32 to vector<16x128xf32>
    %2 = arith.addf %0, %1 : vector<16x128xf32>
    %cst_1 = arith.constant 0.000000e+00 : f32
    %cst_2 = arith.constant 6.000000e+00 : f32
    %3 = vector.broadcast %cst_1 : f32 to vector<16x128xf32>
    %4 = arith.maximumf %3, %2 : vector<16x128xf32>
    %5 = vector.broadcast %cst_2 : f32 to vector<16x128xf32>
    %6 = arith.minimumf %5, %4 : vector<16x128xf32>
    %cst_3 = arith.constant 0.166666672 : f32
    %7 = vector.broadcast %cst_3 : f32 to vector<16x128xf32>
    %8 = arith.mulf %6, %7 : vector<16x128xf32>
    %c0_4 = arith.constant 0 : index
    %c0_5 = arith.constant 0 : index
    %9 = vector.load %arg2[%c0_4, %c0_5] : memref<16x128xf32, #tpu.memory_space<vmem>>, vector<16x128xf32>
    tpu.vector_store %arg2[%c0_4, %c0_5], %8 {strides = array<i32>} : memref<16x128xf32, #tpu.memory_space<vmem>>, vector<16x128xf32>,
    return
  }
  func.func @transform_0(%arg0: i32) -> (i32, i32) {
    %c0_i32 = arith.constant 0 : i32
    %c0_i32_0 = arith.constant 0 : i32
    return %arg0, %c0_i32 : i32, i32
  }
  func.func @transform_1(%arg0: i32) -> (i32, i32) {
    %c0_i32 = arith.constant 0 : i32
    %c0_i32_0 = arith.constant 0 : i32
    return %arg0, %c0_i32 : i32, i32
  }
}

</mosaic_0001>

<bundles_post_ra>
// kernel: tpu_custom_call.1
= control target key start
LH: loop header
LB: loop body
LE: loop exit
PB: predicated region body
PF: predicated region fallthrough
CT: control target
= control target key end

     0   :  { %6 = vsyncpa [#allocation3], 0  ;;  %s132_s0 = inlined_call_operand.hbm [shape: f32[16,128], index: 0, kind: input, shape index: {}]   ;;  %s133_s1 = inlined_call_operand.hbm [shape: f32[16,128], index: 1, kind: output, shape index: {}]  }
   0x1   :  { %7 = vsyncpa [#allocation4], 0  ;;  %s12_s8 = sshll.u32 %s132_s0, 4  ;;  %s112_s9 = smov [#allocation2]   ;;  %s13_s8 = int_to_ptr.hbm [resolvable:$true] %s12_s8 }
   0x2   :  { %s14_s10 = sshll.u32 %s112_s9, 4  ;;  %s113_s11 = smov 128   ;;  %s15_s10 = int_to_ptr.vmem [resolvable:$true] %s14_s10 }
   0x3   :  { %s114_s12 = smov 8  }
   0x4   :  { %20 = dma.hbm_to_vmem [thread:$0]  %s13_s8, 256, %s15_s10, [#allocation3], %s113_s11, %s113_s11, %s114_s12  }
   0x5   :  { %108 = dma.done.wait [#allocation3], 256  }
   0x6   :  { %109 = vsyncadd [#allocation3], 4294967040  ;;  %v25_v0 = vld [vmem:[#allocation2] sm:$0xff]  ;;  %v26_v1 = vld [vmem:[#allocation2 + $0x8] sm:$0xff]  ;;  %s115_s13 = smov [#allocation5]   ;;  %s43_s16 = sshll.u32 %s133_s1, 4  ;;  %s44_s16 = int_to_ptr.hbm [resolvable:$true] %s43_s16 }
   0x7   :  { %v27_v2 = vadd.f32 3.0, %v25_v0  ;;  %v28_v3 = vadd.f32 3.0, %v26_v1  ;;  %s41_s14 = sshll.u32 %s115_s13, 4  ;;  %s42_s14 = int_to_ptr.vmem [resolvable:$true] %s41_s14 }
   0x9   :  { %v29_v4 = vmax.f32 %v27_v2, 0.0  ;;  %v30_v5 = vmax.f32 %v28_v3, 0.0 }
   0xb   :  { %v31_v6 = vmin.f32 %v29_v4, 6.0  ;;  %v32_v7 = vmin.f32 %v30_v5, 6.0 }
   0xd   :  { %v33_v8 = vmul.f32 0.16666667, %v31_v6  ;;  %v34_v9 = vmul.f32 0.16666667, %v32_v7 }
   0xf   :  { %35 = vst [vmem:[#allocation5] sm:$0xff] %v33_v8 }
  0x10   :  { %36 = vst [vmem:[#allocation5 + $0x8] sm:$0xff] %v34_v9 }
  0x11   :  { %49 = dma.vmem_to_hbm [thread:$0]  %s42_s14, 256, %s44_s16, [#allocation4], %s113_s11, %s113_s11, %s114_s12  }
  0x12   :  { %110 = dma.done.wait [#allocation4], 256  }
  0x13   :  { %111 = vsyncadd [#allocation4], 4294967040 }
  0x14   :  { %54 = vsyncpa [#allocation3], 1 }
  0x15   :  { %55 = vsyncpa [#allocation4], 1 }

</bundles_post_ra>
